<compile_context>
chip_gen: v5e
topology: v5e:2x2
jax: 0.10.0
libtpu: 0.0.40
codegen_flags: <defaults>
</compile_context>

<pallas_src>
import jax
import jax.numpy as jnp
from jax.experimental import pallas as pl
from jax.experimental.pallas import tpu as pltpu


def dqn_kernel(xt_ref, w1_ref, b1_ref, w2_ref, b2_ref, w3_ref, b3_ref, o_ref):
    """One batch tile. xt_ref is (4, TB) with the batch on the lane axis."""
    cdt = w1_ref.dtype  # matmul operand dtype (bf16 by default)

    # Layer 1: Linear(4, 64) + ReLU    h1 = relu(W1 @ x^T + b1)   -> (64, TB)
    h1 = jnp.dot(w1_ref[...], xt_ref[...], preferred_element_type=jnp.float32)
    h1 = jnp.maximum(h1 + b1_ref[...], 0.0)

    # Layer 2: Linear(64, 64) + ReLU   h2 = relu(W2 @ h1 + b2)    -> (64, TB)
    h2 = jnp.dot(w2_ref[...], h1.astype(cdt), preferred_element_type=jnp.float32)
    h2 = jnp.maximum(h2 + b2_ref[...], 0.0)

    # Layer 3: Linear(64, 1).  An N=1 matmul wastes the MXU; use a VPU multiply
    # plus a sublane reduction (XLU slot, otherwise idle) in full f32.
    q = jnp.sum(h2 * w3_ref[...], axis=0, keepdims=True) + b3_ref[0, 0]

    # (1, TB) lane-dense store: batch on lanes -> unmasked vector stores.
    o_ref[...] = q


def dqn_forward(x, w1, b1, w2, b2, w3, b3, *, block_b=2048, use_bf16=True):
    """Forward pass. x: (B, 4) f32; params in PyTorch layout (W: [out, in])."""
    B, F = x.shape
    assert F == 4 and w1.shape == (64, 4) and w2.shape == (64, 64) and w3.shape == (1, 64)

    # Batch tile: multiple of 128 (lane width); large tiles amortize the
    # ~0.35 us per-grid-step overhead and keep DMAs overlapped with compute.
    TB = max(128, min(block_b, pl.cdiv(B, 128) * 128))
    Bp = pl.cdiv(B, TB) * TB
    grid = (Bp // TB,)

    cdt = jnp.bfloat16 if use_bf16 else jnp.float32

    # Lane-major plumbing: batch on the lane axis everywhere (layout only).
    xt = jnp.pad(x, ((0, Bp - B), (0, 0))).T.astype(cdt)        # (4, Bp)
    w1c = w1.astype(cdt)                                        # (64, 4)
    w2c = w2.astype(cdt)                                        # (64, 64)
    b1c = b1.reshape(64, 1).astype(jnp.float32)
    b2c = b2.reshape(64, 1).astype(jnp.float32)
    w3c = w3.reshape(1, 64).T.astype(jnp.float32)               # (64, 1)
    b3c = b3.reshape(1, 1).astype(jnp.float32)

    const = lambda i: (0, 0)   # same block every step -> fetched once, resident
    qt = pl.pallas_call(
        dqn_kernel,
        out_shape=jax.ShapeDtypeStruct((1, Bp), jnp.float32),
        grid_spec=pltpu.PrefetchScalarGridSpec(
            num_scalar_prefetch=0,
            grid=grid,
            in_specs=[
                pl.BlockSpec((4, TB), lambda i: (0, i)),             # x^T tile (streamed)
                pl.BlockSpec((64, 4), const),                        # W1
                pl.BlockSpec((64, 1), const),                        # b1
                pl.BlockSpec((64, 64), const),                       # W2
                pl.BlockSpec((64, 1), const),                        # b2
                pl.BlockSpec((64, 1), const),                        # W3^T column
                pl.BlockSpec(memory_space=pltpu.MemorySpace.SMEM),   # b3 scalar
            ],
            out_specs=pl.BlockSpec((1, TB), lambda i: (0, i)),       # lane-dense q
        ),
        compiler_params=pltpu.CompilerParams(
            dimension_semantics=("parallel",)),   # v7x: shard batch over both TCs
    )(xt, w1c, b1c, w2c, b2c, w3c, b3c)

    return qt[0, :B].reshape(B, 1)


def xavier_uniform(key, out_features, in_features):
    bound = (6.0 / (in_features + out_features)) ** 0.5
    return jax.random.uniform(key, (out_features, in_features), jnp.float32,
                              -bound, bound)


def init_params(key):
    # PyTorch nn.Linear layout: W [out, in], b [out]; xavier_uniform_ + zero bias.
    k1, k2, k3 = jax.random.split(key, 3)
    w1 = xavier_uniform(k1, 64, 4)
    w2 = xavier_uniform(k2, 64, 64)
    w3 = xavier_uniform(k3, 1, 64)
    b1 = jnp.zeros((64,), jnp.float32)
    b2 = jnp.zeros((64,), jnp.float32)
    b3 = jnp.zeros((1,), jnp.float32)
    return w1, b1, w2, b2, w3, b3


def reference_forward(x, w1, b1, w2, b2, w3, b3, use_bf16=True):
    # Pure-JAX reference mirroring the kernel math (bf16 operands, f32 accum).
    hp = jax.lax.Precision.HIGHEST

    def cast(v):
        return v.astype(jnp.bfloat16).astype(jnp.float32) if use_bf16 else v

    h = jnp.maximum(jnp.dot(cast(x), cast(w1).T, precision=hp) + b1, 0.0)
    h = jnp.maximum(jnp.dot(cast(h), cast(w2).T, precision=hp) + b2, 0.0)
    return jnp.sum(h * w3, axis=-1, keepdims=True) + b3


if __name__ == "__main__":
    key = jax.random.PRNGKey(0)
    kx, kp = jax.random.split(key)
    params = init_params(kp)

    # Small deterministic input consistent with the module: (batch=8, features=4).
    x_small = jax.random.normal(kx, (8, 4), jnp.float32)
    out_small = jax.block_until_ready(dqn_forward(x_small, *params))
    assert out_small.shape == (8, 1)
    ref_small = reference_forward(x_small, *params)
    assert jnp.allclose(out_small, ref_small, atol=1e-3, rtol=1e-3), "small-batch mismatch"

    # Also exercise the multi-tile (gridded + padded) streaming path.
    x_big = jax.random.normal(kx, (3000, 4), jnp.float32)
    out_big = jax.block_until_ready(dqn_forward(x_big, *params))
    assert out_big.shape == (3000, 1)
    ref_big = reference_forward(x_big, *params)
    assert jnp.allclose(out_big, ref_big, atol=1e-3, rtol=1e-3), "tiled-batch mismatch"

    print("KERNEL_OK")
</pallas_src>

<mosaic_0001>
module attributes {stable_mosaic.version = 11 : i64} {
  func.func @dqn_kernel(%arg0: i32, %arg1: memref<4x128xbf16, #tpu.memory_space<vmem>>, %arg2: memref<64x4xbf16, #tpu.memory_space<vmem>>, %arg3: memref<64x1xf32, #tpu.memory_space<vmem>>, %arg4: memref<64x64xbf16, #tpu.memory_space<vmem>>, %arg5: memref<64x1xf32, #tpu.memory_space<vmem>>, %arg6: memref<64x1xf32, #tpu.memory_space<vmem>>, %arg7: memref<1x1xf32, #tpu.memory_space<smem>>, %arg8: memref<1x128xf32, #tpu.memory_space<vmem>>) attributes {dimension_semantics = [#tpu.dimension_semantics<parallel>], iteration_bounds = array<i64: 1>, scalar_prefetch = 0 : i64, scratch_operands = 0 : i64, tpu.core_type = #tpu.core_type<tc>, window_params = [{transform_indices = @transform_0, window_bounds = array<i64: 4, 128>}, {pipeline_mode = #tpu.pipeline_mode<synchronous>, transform_indices = @transform_1, window_bounds = array<i64: 64, 4>}, {pipeline_mode = #tpu.pipeline_mode<synchronous>, transform_indices = @transform_2, window_bounds = array<i64: 64, 1>}, {pipeline_mode = #tpu.pipeline_mode<synchronous>, transform_indices = @transform_3, window_bounds = array<i64: 64, 64>}, {pipeline_mode = #tpu.pipeline_mode<synchronous>, transform_indices = @transform_4, window_bounds = array<i64: 64, 1>}, {pipeline_mode = #tpu.pipeline_mode<synchronous>, transform_indices = @transform_5, window_bounds = array<i64: 64, 1>}, {transform_indices = @transform_6, window_bounds = array<i64: 1, 1>}, {transform_indices = @transform_7, window_bounds = array<i64: 1, 128>}]} {
    %c0 = arith.constant 0 : index
    %c0_0 = arith.constant 0 : index
    %0 = vector.load %arg2[%c0, %c0_0] : memref<64x4xbf16, #tpu.memory_space<vmem>>, vector<64x4xbf16>
    %c0_1 = arith.constant 0 : index
    %c0_2 = arith.constant 0 : index
    %1 = vector.load %arg1[%c0_1, %c0_2] : memref<4x128xbf16, #tpu.memory_space<vmem>>, vector<4x128xbf16>
    %cst = arith.constant dense<0.000000e+00> : vector<64x128xf32>
    %2 = tpu.matmul %0, %1, %cst {dimension_numbers = #tpu.dot_dimension_numbers<[1], [0], [0], [1], [0, 0, 1, 1], [], []>} : vector<64x4xbf16>, vector<4x128xbf16>, vector<64x128xf32> -> vector<64x128xf32>
    %c0_3 = arith.constant 0 : index
    %c0_4 = arith.constant 0 : index
    %3 = vector.load %arg3[%c0_3, %c0_4] : memref<64x1xf32, #tpu.memory_space<vmem>>, vector<64x1xf32>
    %4 = vector.broadcast %3 : vector<64x1xf32> to vector<64x128xf32>
    %5 = arith.addf %2, %4 : vector<64x128xf32>
    %cst_5 = arith.constant 0.000000e+00 : f32
    %6 = vector.broadcast %cst_5 : f32 to vector<64x128xf32>
    %7 = arith.maximumf %5, %6 : vector<64x128xf32>
    %c0_6 = arith.constant 0 : index
    %c0_7 = arith.constant 0 : index
    %8 = vector.load %arg4[%c0_6, %c0_7] : memref<64x64xbf16, #tpu.memory_space<vmem>>, vector<64x64xbf16>
    %9 = arith.truncf %7 : vector<64x128xf32> to vector<64x128xbf16>
    %cst_8 = arith.constant dense<0.000000e+00> : vector<64x128xf32>
    %10 = tpu.matmul %8, %9, %cst_8 {dimension_numbers = #tpu.dot_dimension_numbers<[1], [0], [0], [1], [0, 0, 1, 1], [], []>} : vector<64x64xbf16>, vector<64x128xbf16>, vector<64x128xf32> -> vector<64x128xf32>
    %c0_9 = arith.constant 0 : index
    %c0_10 = arith.constant 0 : index
    %11 = vector.load %arg5[%c0_9, %c0_10] : memref<64x1xf32, #tpu.memory_space<vmem>>, vector<64x1xf32>
    %12 = vector.broadcast %11 : vector<64x1xf32> to vector<64x128xf32>
    %13 = arith.addf %10, %12 : vector<64x128xf32>
    %cst_11 = arith.constant 0.000000e+00 : f32
    %14 = vector.broadcast %cst_11 : f32 to vector<64x128xf32>
    %15 = arith.maximumf %13, %14 : vector<64x128xf32>
    %c0_12 = arith.constant 0 : index
    %c0_13 = arith.constant 0 : index
    %16 = vector.load %arg6[%c0_12, %c0_13] : memref<64x1xf32, #tpu.memory_space<vmem>>, vector<64x1xf32>
    %17 = vector.broadcast %16 : vector<64x1xf32> to vector<64x128xf32>
    %18 = arith.mulf %15, %17 : vector<64x128xf32>
    %cst_14 = arith.constant dense<0.000000e+00> : vector<128xf32>
    %19 = vector.multi_reduction <add>, %18, %cst_14 [0] : vector<64x128xf32> to vector<128xf32>
    %20 = vector.shape_cast %19 : vector<128xf32> to vector<1x128xf32>
    %c0_15 = arith.constant 0 : index
    %c0_16 = arith.constant 0 : index
    %21 = memref.load %arg7[%c0_15, %c0_16] : memref<1x1xf32, #tpu.memory_space<smem>>
    %22 = vector.broadcast %21 : f32 to vector<1x128xf32>
    %23 = arith.addf %20, %22 : vector<1x128xf32>
    %c0_17 = arith.constant 0 : index
    %c0_18 = arith.constant 0 : index
    %24 = vector.load %arg8[%c0_17, %c0_18] : memref<1x128xf32, #tpu.memory_space<vmem>>, vector<1x128xf32>
    tpu.vector_store %arg8[%c0_17, %c0_18], %23 {strides = array<i32>} : memref<1x128xf32, #tpu.memory_space<vmem>>, vector<1x128xf32>,
    return
  }
  func.func @transform_0(%arg0: i32) -> (i32, i32) {
    %c0_i32 = arith.constant 0 : i32
    %c0_i32_0 = arith.constant 0 : i32
    return %c0_i32, %arg0 : i32, i32
  }
  func.func @transform_1(%arg0: i32) -> (i32, i32) {
    %c0_i32 = arith.constant 0 : i32
    %c0_i32_0 = arith.constant 0 : i32
    %c0_i32_1 = arith.constant 0 : i32
    return %c0_i32, %c0_i32_0 : i32, i32
  }
  func.func @transform_2(%arg0: i32) -> (i32, i32) {
    %c0_i32 = arith.constant 0 : i32
    %c0_i32_0 = arith.constant 0 : i32
    %c0_i32_1 = arith.constant 0 : i32
    return %c0_i32, %c0_i32_0 : i32, i32
  }
  func.func @transform_3(%arg0: i32) -> (i32, i32) {
    %c0_i32 = arith.constant 0 : i32
    %c0_i32_0 = arith.constant 0 : i32
    %c0_i32_1 = arith.constant 0 : i32
    return %c0_i32, %c0_i32_0 : i32, i32
  }
  func.func @transform_4(%arg0: i32) -> (i32, i32) {
    %c0_i32 = arith.constant 0 : i32
    %c0_i32_0 = arith.constant 0 : i32
    %c0_i32_1 = arith.constant 0 : i32
    return %c0_i32, %c0_i32_0 : i32, i32
  }
  func.func @transform_5(%arg0: i32) -> (i32, i32) {
    %c0_i32 = arith.constant 0 : i32
    %c0_i32_0 = arith.constant 0 : i32
    %c0_i32_1 = arith.constant 0 : i32
    return %c0_i32, %c0_i32_0 : i32, i32
  }
  func.func @transform_6(%arg0: i32) -> (i32, i32) {
    %c0_i32 = arith.constant 0 : i32
    %c0_i32_0 = arith.constant 0 : i32
    %c0_i32_1 = arith.constant 0 : i32
    return %c0_i32, %c0_i32_0 : i32, i32
  }
  func.func @transform_7(%arg0: i32) -> (i32, i32) {
    %c0_i32 = arith.constant 0 : i32
    %c0_i32_0 = arith.constant 0 : i32
    return %c0_i32, %arg0 : i32, i32
  }
}

</mosaic_0001>

<bundles_post_ra>
// kernel: tpu_custom_call.1
= control target key start
LH: loop header
LB: loop body
LE: loop exit
PB: predicated region body
PF: predicated region fallthrough
CT: control target
= control target key end

     0   :  { %vm119_vm0 = vcmask 1041408   ;;  %v463_v3 = vmov 0   ;;  %vm106_vm1 = vcmask 31744   ;;  %s614_s0 = inlined_call_operand.vmem [shape: bf16[4,128], index: 0, kind: input, shape index: {}]   ;;  %s615_s1 = inlined_call_operand.vmem [shape: bf16[64,4], index: 1, kind: input, shape index: {}]   ;;  %s616_s2 = inlined_call_operand.vmem [shape: f32[64,1], index: 2, kind: input, shape index: {}]   ;;  %s617_s3 = inlined_call_operand.vmem [shape: bf16[64,64], index: 3, kind: input, shape index: {}]   ;;  %s618_s4 = inlined_call_operand.vmem [shape: f32[64,1], index: 4, kind: input, shape index: {}]   ;;  %s619_s5 = inlined_call_operand.vmem [shape: f32[64,1], index: 5, kind: input, shape index: {}]   ;;  %s620_s6 = inlined_call_operand.<no memory space> [shape: f32[1,1], index: 6, kind: input, shape index: {}]   ;;  %s621_s7 = inlined_call_operand.hbm [shape: f32[1,128], index: 7, kind: output, shape index: {}]  }
   0x1   :  { %v44_v0 = vld [vmem:[%s616_s2 + $0x30] sm:$0xff]  ;;  %v42_v1 = vld [vmem:[%s616_s2 + $0x20] sm:$0xff]  ;;  %435 = vset.pattern.permute.xlu1 %v463_v3  ;;  %434 = vset.pattern.permute.xlu0 %v463_v3  ;;  %v420_v5 = vld [vmem:[%s615_s1 + $0x8] sm:$0xff] }
   0x2   :  { %v37_v2 = vld [vmem:[%s614_s0] sm:$0x3]  ;;  %78 = vperm.xlu0 %434, %v44_v0   ;;  %68 = vperm.xlu1 %435, %v42_v1   ;;  %v40_v6 = vld [vmem:[%s616_s2 + $0x10] sm:$0xff] }
   0x3   :  { %v121_v4 = vsel %vm119_vm0, %v37_v2, 0  ;;  %436 = vset.pattern.permute.xlu2 %v463_v3  ;;  %v419_v7 = vld [vmem:[%s615_s1] sm:$0xff] }
   0x4   :  { %427 = vmatpush.bf16.msra.mxu3 %v121_v4  ;;  %58 = vperm.xlu2 %436, %v40_v6  }
   0x5   :  { %130 = vmatpush.bf16.msra.mxu0 %v121_v4 }
   0x6   :  { %13 = vsyncpa [#allocation4], 0  ;;  %v45_v8 = vld [vmem:[%s616_s2 + $0x38] sm:$0xff]  ;;  %v43_v9 = vld [vmem:[%s616_s2 + $0x28] sm:$0xff]  ;;  %vm240_vm2 = vcmask 523264   ;;  %s464_s14 = smov [#allocation3]  }
   0x7   :  { %396 = vmatmul.msk.bf16.vlgmr.msra.gmra.mxu3 %vm106_vm1, %v420_v5  ;;  %v41_v10 = vld [vmem:[%s616_s2 + $0x18] sm:$0xff]  ;;  %v39_v11 = vld [vmem:[%s616_s2 + $0x8] sm:$0xff]  ;;  %v38_v12 = vld [vmem:[%s616_s2] sm:$0xff]  ;;  %s368_s15 = sshll.u32 %s464_s14, 4  ;;  %s370_s18 = sshll.u32 %s621_s7, 4  ;;  %s369_s15 = int_to_ptr.vmem [resolvable:$true] %s368_s15  ;;  %s371_s18 = int_to_ptr.hbm [resolvable:$true] %s370_s18 }
   0x8   :  { %395 = vmatmul.msk.bf16.vlgmr.msra.gmra.mxu0 %vm106_vm1, %v419_v7  ;;  %v172_v13 = vld [vmem:[%s618_s4] sm:$0xff]  ;;  %v421_v14 = vld [vmem:[%s615_s1 + $0x10] sm:$0xff]  ;;  %v173_v16 = vld [vmem:[%s618_s4 + $0x8] sm:$0xff] }
   0x9   :  { %v174_v15 = vld [vmem:[%s618_s4 + $0x10] sm:$0xff]  ;;  %v175_v17 = vld [vmem:[%s618_s4 + $0x18] sm:$0xff]  ;;  %v290_v18 = vld [vmem:[%s619_s5] sm:$0xff] }
   0xa   :  { %83 = vperm.xlu0 %434, %v45_v8   ;;  %73 = vperm.xlu1 %435, %v43_v9   ;;  %v176_v19 = vld [vmem:[%s618_s4 + $0x20] sm:$0xff]  ;;  %v291_v20 = vld [vmem:[%s619_s5 + $0x8] sm:$0xff]  ;;  %v422_v21 = vld [vmem:[%s615_s1 + $0x18] sm:$0xff] }
   0xb   :  { %v177_v22 = vld [vmem:[%s618_s4 + $0x28] sm:$0xff]  ;;  %v292_v23 = vld [vmem:[%s619_s5 + $0x10] sm:$0xff]  ;;  %v293_v24 = vld [vmem:[%s619_s5 + $0x18] sm:$0xff] }
   0xc   :  { %63 = vperm.xlu2 %436, %v41_v10   ;;  %v294_v25 = vld [vmem:[%s619_s5 + $0x20] sm:$0xff]  ;;  %v178_v26 = vld [vmem:[%s618_s4 + $0x30] sm:$0xff]  ;;  %v179_v27 = vld [vmem:[%s618_s4 + $0x38] sm:$0xff] }
   0xd   :  { %v296_v28 = vld [vmem:[%s619_s5 + $0x30] sm:$0xff]  ;;  %v295_v29 = vld [vmem:[%s619_s5 + $0x28] sm:$0xff]  ;;  %v297_v30 = vld [vmem:[%s619_s5 + $0x38] sm:$0xff] }
   0xe   :  { %v423_v3 = vld [vmem:[%s617_s3] sm:$0xff]  ;;  %v425_v4 = vld [vmem:[%s617_s3 + $0x10] sm:$0xff]  ;;  %v424_v5 = vld [vmem:[%s617_s3 + $0x8] sm:$0xff] }
   0xf   :  { %v426_v6 = vld [vmem:[%s617_s3 + $0x18] sm:$0xff] }
  0x12   :  { %53 = vperm.xlu1 %435, %v39_v11   ;;  %48 = vperm.xlu0 %434, %v38_v12  }
  0x14   :  { %182 = vperm.xlu2 %436, %v172_v13  }
  0x17   :  { %397 = vmatmul.msk.bf16.gmra.mxu3 %vm106_vm1, %v421_v14 }
  0x1a   :  { %192 = vperm.xlu1 %435, %v174_v15   ;;  %187 = vperm.xlu0 %434, %v173_v16  }
  0x1c   :  { %197 = vperm.xlu2 %436, %v175_v17  }
  0x22   :  { %300 = vperm.xlu1 %435, %v290_v18   ;;  %202 = vperm.xlu0 %434, %v176_v19  }
  0x24   :  { %305 = vperm.xlu2 %436, %v291_v20  }
  0x27   :  { %398 = vmatmul.msk.bf16.gmra.mxu3 %vm106_vm1, %v422_v21 }
  0x2a   :  { %207 = vperm.xlu1 %435, %v177_v22   ;;  %310 = vperm.xlu0 %434, %v292_v23  }
  0x2c   :  { %315 = vperm.xlu2 %436, %v293_v24  }
  0x32   :  { %320 = vperm.xlu1 %435, %v294_v25   ;;  %212 = vperm.xlu0 %434, %v178_v26  }
  0x34   :  { %217 = vperm.xlu2 %436, %v179_v27  }
  0x3a   :  { %330 = vperm.xlu1 %435, %v296_v28   ;;  %325 = vperm.xlu0 %434, %v295_v29  }
  0x3c   :  { %335 = vperm.xlu2 %436, %v297_v30  }
  0x5e   :  { %v59_v38 = vpop.permute.xlu2 %58 }
  0x66   :  { %v64_v49 = vpop.permute.xlu2 %63 }
  0x6e   :  { %v183_v7 = vpop.permute.xlu2 %182 }
  0x74   :  { %v79_v35 = vpop.permute.xlu0 %78  ;;  %v69_v36 = vpop.permute.xlu1 %68 }
  0x76   :  { %v198_v10 = vpop.permute.xlu2 %197 }
  0x7c   :  { %v84_v40 = vpop.permute.xlu0 %83  ;;  %v74_v41 = vpop.permute.xlu1 %73 }
  0x7e   :  { %v306_v14 = vpop.permute.xlu2 %305 }
  0x84   :  { %v54_v56 = vpop.permute.xlu1 %53  ;;  %v49_v57 = vpop.permute.xlu0 %48 }
  0x85   :  { %v132_v39 = vpop.f32.mrf.mxu0 }
  0x86   :  { %v133_v59 = vadd.f32 %v132_v39, %v49_v57  ;;  %v316_v21 = vpop.permute.xlu2 %315 }
  0x88   :  { %v152_v63 = vmax.f32 %v133_v59, 0.0 }
  0x8a   :  { %v137_v31 = vpop.f32.mrf.mxu3 }
  0x8b   :  { %v138_v54 = vadd.f32 %v137_v31, %v59_v38 }
  0x8c   :  { %v188_v8 = vpop.permute.xlu0 %187  ;;  %v193_v9 = vpop.permute.xlu1 %192 }
  0x8d   :  { %v134_v53 = vpop.f32.mrf.mxu0  ;;  %v154_v62 = vmax.f32 %v138_v54, 0.0 }
  0x8e   :  { %v135_v60 = vadd.f32 %v134_v53, %v54_v56  ;;  %v218_v38 = vpop.permute.xlu2 %217 }
  0x90   :  { %v153_v0 = vmax.f32 %v135_v60, 0.0 }
  0x92   :  { %v139_v32 = vpop.f32.mrf.mxu3  ;;  %v168_v2 = vpack.c.bf16 %v153_v0, %v152_v63 }
  0x93   :  { %v140_v50 = vadd.f32 %v139_v32, %v64_v49 }
  0x94   :  { %v203_v12 = vpop.permute.xlu0 %202  ;;  %v301_v13 = vpop.permute.xlu1 %300 }
  0x95   :  { %v155_v58 = vmax.f32 %v140_v50, 0.0 }
  0x97   :  { %v169_v1 = vpack.c.bf16 %v155_v58, %v154_v62  ;;  %v336_v58 = vpop.permute.xlu2 %335 }
  0x9a   :  { %v142_v33 = vpop.f32.mrf.mxu3 }
  0x9b   :  { %v143_v46 = vadd.f32 %v142_v33, %v69_v36 }
  0x9c   :  { %v311_v17 = vpop.permute.xlu0 %310  ;;  %v208_v18 = vpop.permute.xlu1 %207 }
  0x9d   :  { %v156_v55 = vmax.f32 %v143_v46, 0.0 }
  0xa2   :  { %v144_v34 = vpop.f32.mrf.mxu3 }
  0xa3   :  { %v145_v44 = vadd.f32 %v144_v34, %v74_v41 }
  0xa4   :  { %v213_v28 = vpop.permute.xlu0 %212  ;;  %v321_v32 = vpop.permute.xlu1 %320 }
  0xa5   :  { %v157_v51 = vmax.f32 %v145_v44, 0.0 }
  0xa7   :  { %v170_v61 = vpack.c.bf16 %v157_v51, %v156_v55 }
  0xaa   :  { %v147_v37 = vpop.f32.mrf.mxu3 }
  0xab   :  { %v148_v42 = vadd.f32 %v147_v37, %v79_v35 }
  0xac   :  { %v326_v51 = vpop.permute.xlu0 %325  ;;  %v331_v55 = vpop.permute.xlu1 %330 }
  0xad   :  { %v158_v47 = vmax.f32 %v148_v42, 0.0 }
  0xb2   :  { %v149_v43 = vpop.f32.mrf.mxu3 }
  0xb3   :  { %v150_v45 = vadd.f32 %v149_v43, %v84_v40 }
  0xb5   :  { %v159_v48 = vmax.f32 %v150_v45, 0.0 }
  0xb7   :  { %v171_v52 = vpack.c.bf16 %v159_v48, %v158_v47 }
  0xb9   :  { %257 = vmatpush.bf16.msra.mxu1 %v171_v52  ;;  %428 = vmatpush.bf16.msra.mxu2 %v171_v52 }
  0xbd   :  { %258 = vmatpush.bf16.msra.mxu1 %v170_v61  ;;  %429 = vmatpush.bf16.msra.mxu2 %v170_v61 }
  0xc1   :  { %259 = vmatpush.bf16.msra.mxu1 %v169_v1  ;;  %430 = vmatpush.bf16.msra.mxu2 %v169_v1 }
  0xc5   :  { %260 = vmatpush.bf16.msra.mxu1 %v168_v2  ;;  %431 = vmatpush.bf16.msra.mxu2 %v168_v2 }
  0xc8   :  { %415 = vmatmul.msk.bf16.vlgmr.msra.gmra.mxu1 %vm240_vm2, %v423_v3  ;;  %417 = vmatmul.msk.bf16.vlgmr.msra.gmra.mxu2 %vm240_vm2, %v425_v4  ;;  %v360_v3 = vstv %s620_s6 }
  0xd8   :  { %416 = vmatmul.msk.bf16.gmra.mxu1 %vm240_vm2, %v424_v5  ;;  %418 = vmatmul.msk.bf16.gmra.mxu2 %vm240_vm2, %v426_v6 }
 0x145   :  { %v262_v11 = vpop.f32.mrf.mxu1 }
 0x146   :  { %v263_v23 = vadd.f32 %v262_v11, %v183_v7 }
 0x148   :  { %v282_v26 = vmax.f32 %v263_v23, 0.0 }
 0x14a   :  { %v338_v34 = vmul.f32 %v301_v13, %v282_v26 }
 0x14b   :  { %v272_v15 = vpop.f32.mrf.mxu2 }
 0x14c   :  { %v273_v30 = vadd.f32 %v272_v15, %v203_v12 }
 0x14d   :  { %v264_v16 = vpop.f32.mrf.mxu1 }
 0x14e   :  { %v265_v20 = vadd.f32 %v264_v16, %v188_v8  ;;  %v286_v39 = vmax.f32 %v273_v30, 0.0 }
 0x150   :  { %v283_v25 = vmax.f32 %v265_v20, 0.0  ;;  %v342_v47 = vmul.f32 %v321_v32, %v286_v39 }
 0x152   :  { %v339_v31 = vmul.f32 %v306_v14, %v283_v25 }
 0x153   :  { %v274_v19 = vpop.f32.mrf.mxu2 }
 0x154   :  { %v275_v35 = vadd.f32 %v274_v19, %v208_v18  ;;  %v346_v40 = vadd.f32 %v339_v31, %v338_v34 }
 0x155   :  { %v267_v22 = vpop.f32.mrf.mxu1 }
 0x156   :  { %v268_v24 = vadd.f32 %v267_v22, %v193_v9  ;;  %v287_v43 = vmax.f32 %v275_v35, 0.0 }
 0x158   :  { %v284_v27 = vmax.f32 %v268_v24, 0.0  ;;  %v343_v52 = vmul.f32 %v326_v51, %v287_v43 }
 0x15a   :  { %v340_v36 = vmul.f32 %v311_v17, %v284_v27 }
 0x15b   :  { %v277_v29 = vpop.f32.mrf.mxu2 }
 0x15c   :  { %v278_v41 = vadd.f32 %v277_v29, %v213_v28  ;;  %v347_v44 = vadd.f32 %v346_v40, %v340_v36 }
 0x15d   :  { %v269_v33 = vpop.f32.mrf.mxu1 }
 0x15e   :  { %v270_v37 = vadd.f32 %v269_v33, %v198_v10  ;;  %v288_v48 = vmax.f32 %v278_v41, 0.0 }
 0x160   :  { %v285_v42 = vmax.f32 %v270_v37, 0.0  ;;  %v344_v56 = vmul.f32 %v331_v55, %v288_v48 }
 0x162   :  { %v341_v45 = vmul.f32 %v316_v21, %v285_v42 }
 0x163   :  { %v279_v46 = vpop.f32.mrf.mxu2 }
 0x164   :  { %v348_v49 = vadd.f32 %v347_v44, %v341_v45  ;;  %v280_v50 = vadd.f32 %v279_v46, %v218_v38 }
 0x166   :  { %v349_v53 = vadd.f32 %v348_v49, %v342_v47  ;;  %v289_v54 = vmax.f32 %v280_v50, 0.0 }
 0x168   :  { %v350_v57 = vadd.f32 %v349_v53, %v343_v52  ;;  %v345_v59 = vmul.f32 %v336_v58, %v289_v54 }
 0x16a   :  { %v351_v60 = vadd.f32 %v350_v57, %v344_v56 }
 0x16c   :  { %v352_v61 = vadd.f32 %v351_v60, %v345_v59 }
 0x16e   :  { %v353_v62 = vrot.slane %v352_v61, 4 }
 0x170   :  { %v354_v63 = vadd.f32 %v353_v62, %v352_v61 }
 0x172   :  { %v355_v0 = vrot.slane %v354_v63, 2 }
 0x174   :  { %v356_v1 = vadd.f32 %v355_v0, %v354_v63 }
 0x176   :  { %v357_v2 = vrot.slane %v356_v1, 1 }
 0x178   :  { %v358_v4 = vadd.f32 %v357_v2, %v356_v1 }
 0x17a   :  { %v361_v5 = vadd.f32 %v360_v3, %v358_v4 }
 0x17c   :  { %362 = vst [vmem:[#allocation3] sm:$0x1] %v361_v5 }
 0x17d   :  { %373 = dma.vmem_to_hbm [thread:$0]  %s369_s15, 16, %s371_s18, [#allocation4]  }
 0x17e   :  { %461 = dma.done.wait [#allocation4], 16  }
 0x17f   :  { %462 = vsyncadd [#allocation4], 4294967280 }
 0x180   :  { %378 = vsyncpa [#allocation4], 1 }

</bundles_post_ra>
